<compile_context>
chip_gen: v7x
topology: tpu7x:2x2x1
jax: 0.10.0
libtpu: 0.0.40
codegen_flags: <defaults>
</compile_context>

<pallas_src>
import math
from functools import partial

import jax
import jax.numpy as jnp
from jax.experimental import pallas as pl
from jax.experimental.pallas import tpu as pltpu

LANES = 128


def _round_up(x, m):
    return ((x + m - 1) // m) * m


def wing_loss_kernel(*refs, omega, inv_epsilon, C, rows_valid, tm, num_tiles,
                     use_target_weight, mask_last_tile):
    if use_target_weight:
        pred_ref, target_ref, twgt_ref, out_ref = refs
    else:
        pred_ref, target_ref, out_ref = refs
        twgt_ref = None

    # Cast in-kernel (free VPU work) so inputs stream through HBM in their
    # native dtype (halves HBM traffic for bf16 inputs).
    pred = pred_ref[...].astype(jnp.float32)
    tgt = target_ref[...].astype(jnp.float32)
    diff = tgt - pred                                      # (TM, 128) f32
    if use_target_weight:
        # |tw*t - tw*p| == |(t - p) * tw|
        diff = diff * twgt_ref[...].astype(jnp.float32)
    delta = jnp.abs(diff)

    small = omega * jnp.log(1.0 + delta * inv_epsilon)     # EUP log, full-lane tile
    large = delta - C
    losses = jnp.where(delta < omega, small, large)

    if mask_last_tile:
        # Only the final grid block is partially valid (rows beyond the array
        # are unspecified data in the VMEM buffer); mask just that tile.
        pid = pl.program_id(0)

        @pl.when(pid == num_tiles - 1)
        def _():
            rows_here = rows_valid - pid * tm
            row_ids = jax.lax.broadcasted_iota(jnp.int32, losses.shape, 0)
            out_ref[...] = jnp.sum(
                jnp.where(row_ids < rows_here, losses, 0.0), keepdims=True)

        @pl.when(pid != num_tiles - 1)
        def _():
            out_ref[...] = jnp.sum(losses, keepdims=True)
    else:
        out_ref[...] = jnp.sum(losses, keepdims=True)


def wing_loss(output, target, target_weight=None, *,
              omega=10.0, epsilon=2.0, use_target_weight=False,
              loss_weight=1.0):
    """Pallas WingLoss forward. output/target/(target_weight): [N, K, D]."""
    # omega > 0 guarantees zero-padded elements (delta == 0) land in the log
    # branch and contribute exactly 0 loss; epsilon > 0 keeps 1/epsilon finite.
    assert omega > 0.0 and epsilon > 0.0

    N = output.shape[0]
    M = int(output.size)
    C = omega * (1.0 - math.log(1.0 + omega / epsilon))
    inv_epsilon = 1.0 / epsilon

    if use_target_weight:
        assert target_weight is not None
        if target_weight.ndim == output.ndim - 1:
            # Convenience: accept [N, K] weights by broadcasting over D.
            target_weight = jnp.broadcast_to(target_weight[..., None],
                                             output.shape)

    # ---- lane-dense layout: (ROWS, 128); pad only if M is not lane-aligned --
    rows = pl.cdiv(M, LANES)
    padded = rows * LANES

    def lane_dense(x):
        x = x.reshape(-1)                     # keep native dtype (no astype pass)
        if padded != M:
            x = jnp.pad(x, (0, padded - M))   # zeros -> zero loss (omega > 0)
        return x.reshape(rows, LANES)

    inputs = [lane_dense(output), lane_dense(target)]
    if use_target_weight:
        inputs.append(lane_dense(target_weight))

    # Row tile: as big as reasonable (amortize per-step overhead), multiple of
    # 8 sublanes for 32-bit dtypes (16 for packed 16-bit dtypes), but keep at
    # least 2 grid steps when possible so v7x's two TensorCores both work.
    sub = 16 if jnp.dtype(output.dtype).itemsize < 4 else 8
    TM = min(2048, max(sub, _round_up(pl.cdiv(rows, 2), sub)))
    if TM >= rows:
        TM = rows                              # single full-array block
        num_tiles = 1
        mask_last_tile = False
    else:
        num_tiles = pl.cdiv(rows, TM)
        mask_last_tile = (rows % TM) != 0      # only the last block is partial

    kernel = partial(wing_loss_kernel,
                     omega=float(omega), inv_epsilon=float(inv_epsilon),
                     C=float(C), rows_valid=rows, tm=TM, num_tiles=num_tiles,
                     use_target_weight=use_target_weight,
                     mask_last_tile=mask_last_tile)

    tile_spec = pl.BlockSpec((TM, LANES), lambda i: (i, 0))
    partials = pl.pallas_call(
        kernel,
        out_shape=jax.ShapeDtypeStruct((num_tiles, 1), jnp.float32),
        grid=(num_tiles,),
        in_specs=[tile_spec] * len(inputs),
        out_specs=pl.BlockSpec((1, 1), lambda i: (i, 0)),
        compiler_params=pltpu.CompilerParams(
            dimension_semantics=("parallel",)),
    )(*inputs)

    # Global mean over N and loss_weight folded into the final scalar.
    return jnp.sum(partials) * (loss_weight / float(N))


# ---------------------------------------------------------------------------
# Pure-JAX reference (mirrors the PyTorch forward)
# ---------------------------------------------------------------------------
def wing_loss_ref(output, target, target_weight=None, *,
                  omega=10.0, epsilon=2.0, use_target_weight=False,
                  loss_weight=1.0):
    C = omega * (1.0 - math.log(1.0 + omega / epsilon))
    pred = output.astype(jnp.float32)
    tgt = target.astype(jnp.float32)
    if use_target_weight:
        pred = pred * target_weight
        tgt = tgt * target_weight
    delta = jnp.abs(tgt - pred)
    losses = jnp.where(delta < omega,
                       omega * jnp.log(1.0 + delta / epsilon),
                       delta - C)
    return jnp.mean(jnp.sum(losses, axis=(1, 2)), axis=0) * loss_weight


if __name__ == "__main__":
    key = jax.random.PRNGKey(0)
    k_pred, k_target, k_tw, k2p, k2t = jax.random.split(key, 5)

    # Small shapes consistent with the module: N=2 samples, K=8 keypoints, D=2
    N, K, D = 2, 8, 2
    pred = jax.random.normal(k_pred, (N, K, D), jnp.float32) * 8.0
    target = jax.random.normal(k_target, (N, K, D), jnp.float32) * 8.0
    tw = jax.random.uniform(k_tw, (N, K, D), jnp.float32)

    # No target weight (default path)
    out = jax.block_until_ready(wing_loss(pred, target))
    ref = wing_loss_ref(pred, target)
    assert jnp.allclose(out, ref, rtol=1e-5, atol=1e-5), (out, ref)

    # With target weight
    out_w = jax.block_until_ready(
        wing_loss(pred, target, target_weight=tw, use_target_weight=True,
                  loss_weight=0.5))
    ref_w = wing_loss_ref(pred, target, target_weight=tw,
                          use_target_weight=True, loss_weight=0.5)
    assert jnp.allclose(out_w, ref_w, rtol=1e-5, atol=1e-5), (out_w, ref_w)

    # Slightly larger case exercising the multi-tile grid + partial last tile.
    N2, K2, D2 = 8, 128, 3
    pred2 = jax.random.normal(k2p, (N2, K2, D2), jnp.float32) * 6.0
    target2 = jax.random.normal(k2t, (N2, K2, D2), jnp.float32) * 6.0
    out2 = jax.block_until_ready(wing_loss(pred2, target2))
    ref2 = wing_loss_ref(pred2, target2)
    assert jnp.allclose(out2, ref2, rtol=1e-5, atol=1e-5), (out2, ref2)

    print("KERNEL_OK")
</pallas_src>

<mosaic_0001>
module attributes {stable_mosaic.version = 11 : i64} {
  func.func @wing_loss_kernel(%arg0: i32, %arg1: memref<1x128xf32, #tpu.memory_space<vmem>>, %arg2: memref<1x128xf32, #tpu.memory_space<vmem>>, %arg3: memref<1x1xf32, #tpu.memory_space<vmem>>) attributes {dimension_semantics = [#tpu.dimension_semantics<parallel>], iteration_bounds = array<i64: 1>, scalar_prefetch = 0 : i64, scratch_operands = 0 : i64, tpu.core_type = #tpu.core_type<tc>, window_params = [{transform_indices = @transform_0, window_bounds = array<i64: 1, 128>}, {transform_indices = @transform_1, window_bounds = array<i64: 1, 128>}, {transform_indices = @transform_2, window_bounds = array<i64: 1, 1>}]} {
    %c0 = arith.constant 0 : index
    %c0_0 = arith.constant 0 : index
    %0 = vector.load %arg1[%c0, %c0_0] : memref<1x128xf32, #tpu.memory_space<vmem>>, vector<1x128xf32>
    %c0_1 = arith.constant 0 : index
    %c0_2 = arith.constant 0 : index
    %1 = vector.load %arg2[%c0_1, %c0_2] : memref<1x128xf32, #tpu.memory_space<vmem>>, vector<1x128xf32>
    %2 = arith.subf %1, %0 : vector<1x128xf32>
    %3 = math.absf %2 : vector<1x128xf32>
    %cst = arith.constant 5.000000e-01 : f32
    %4 = vector.broadcast %cst : f32 to vector<1x128xf32>
    %5 = arith.mulf %3, %4 : vector<1x128xf32>
    %cst_3 = arith.constant 1.000000e+00 : f32
    %6 = vector.broadcast %cst_3 : f32 to vector<1x128xf32>
    %7 = arith.addf %6, %5 : vector<1x128xf32>
    %8 = math.log %7 : vector<1x128xf32>
    %cst_4 = arith.constant 1.000000e+01 : f32
    %9 = vector.broadcast %cst_4 : f32 to vector<1x128xf32>
    %10 = arith.mulf %9, %8 : vector<1x128xf32>
    %cst_5 = arith.constant -7.9175949 : f32
    %11 = vector.broadcast %cst_5 : f32 to vector<1x128xf32>
    %12 = arith.subf %3, %11 : vector<1x128xf32>
    %cst_6 = arith.constant 1.000000e+01 : f32
    %13 = vector.broadcast %cst_6 : f32 to vector<1x128xf32>
    %14 = arith.cmpf olt, %3, %13 : vector<1x128xf32>
    %15 = arith.select %14, %10, %12 : vector<1x128xi1>, vector<1x128xf32>
    %16 = vector.shape_cast %15 : vector<1x128xf32> to vector<1x1x128xf32>
    %cst_7 = arith.constant dense<0.000000e+00> : vector<1xf32>
    %17 = vector.multi_reduction <add>, %16, %cst_7 [1, 2] : vector<1x1x128xf32> to vector<1xf32>
    %18 = vector.shape_cast %17 : vector<1xf32> to vector<1x1x1xf32>
    %19 = vector.extract %18[0, 0, 0] : f32 from vector<1x1x1xf32>
    %20 = vector.broadcast %19 : f32 to vector<1x1xf32>
    %c0_8 = arith.constant 0 : index
    %c0_9 = arith.constant 0 : index
    %21 = vector.load %arg3[%c0_8, %c0_9] : memref<1x1xf32, #tpu.memory_space<vmem>>, vector<1x1xf32>
    tpu.vector_store %arg3[%c0_8, %c0_9], %20 {strides = array<i32>} : memref<1x1xf32, #tpu.memory_space<vmem>>, vector<1x1xf32>,
    return
  }
  func.func @transform_0(%arg0: i32) -> (i32, i32) {
    %c0_i32 = arith.constant 0 : i32
    %c0_i32_0 = arith.constant 0 : i32
    return %arg0, %c0_i32 : i32, i32
  }
  func.func @transform_1(%arg0: i32) -> (i32, i32) {
    %c0_i32 = arith.constant 0 : i32
    %c0_i32_0 = arith.constant 0 : i32
    return %arg0, %c0_i32 : i32, i32
  }
  func.func @transform_2(%arg0: i32) -> (i32, i32) {
    %c0_i32 = arith.constant 0 : i32
    %c0_i32_0 = arith.constant 0 : i32
    return %arg0, %c0_i32 : i32, i32
  }
}

</mosaic_0001>

<bundles_post_ra>
// kernel: tpu_custom_call.1
= control target key start
LH: loop header
LB: loop body
LE: loop exit
PB: predicated region body
PF: predicated region fallthrough
CT: control target
= control target key end

     0   :  { %7 = vsyncpa [#allocation3], 0  ;;  %s164_s0 = inlined_call_operand.hbm [shape: f32[1,128], index: 0, kind: input, shape index: {}]   ;;  %s165_s1 = inlined_call_operand.vmem [shape: f32[1,128], index: 1, kind: input, shape index: {}]   ;;  %s166_s2 = inlined_call_operand.hbm [shape: f32[1,1], index: 2, kind: output, shape index: {}]  }
   0x1   :  { %8 = vsyncpa [#allocation4], 0  ;;  %s120_s9 = smov [#allocation2]   ;;  %s72_s13 = scalar_lea.hbm %s164_s0, 16 }
   0x2   :  { %s15_s10 = sshll.u32 %s120_s9, 4  ;;  %p73_p0 = scmp.ne.s32.totalorder %s164_s0, %s72_s13  ;;  %s16_s10 = int_to_ptr.vmem [resolvable:$true] %s15_s10 }
   0x3   :  { %p76_p1 = scmp.lt.u32.totalorder %s72_s13, %s164_s0 }
   0x5   :  { %p78_p2 = pnand %p76_p1, %p73_p0 }
   0x7   :  { %81 = shalt.err (!%p78_p2)
}
   0x8   :  { %s82_s18 = scalar_lea.vmem %s16_s10, 16  ;;  %s86_s19 = scalar_lea.vmem %s16_s10, 32 }
   0x9   :  { %p83_p3 = scmp.ne.s32.totalorder %s16_s10, %s82_s18  ;;  %p87_p4 = scmp.lt.s32.totalorder %s16_s10, %s16_s10 }
   0xa   :  { %p88_p5 = scmp.lt.s32.totalorder %s86_s19, %s82_s18 }
   0xc   :  { %p89_p6 = por %p88_p5, %p87_p4 }
   0xe   :  { %p90_p7 = pnand %p89_p6, %p83_p3 }
  0x10   :  { %93 = shalt.err (!%p90_p7)
}
  0x11   :  { %18 = dma.hbm_to_vmem [thread:$0]  %s164_s0, 16, %s16_s10, [#allocation3]  }
  0x12   :  { %116 = dma.done.wait [#allocation3], 16  }
  0x13   :  { %117 = vsyncadd [#allocation3], 4294967280  ;;  %v24_v0 = vld [vmem:[#allocation2] sm:$0x1]  ;;  %vm36_vm1 = vcmask 1040384   ;;  %s121_s0 = smov [#allocation5]  }
  0x14   :  { %v25_v1 = vld [vmem:[%s165_s1] sm:$0x1]  ;;  %s56_s1 = sshll.u32 %s121_s0, 4  ;;  %vm48_vm2 = vcmask 0   ;;  %s57_s1 = int_to_ptr.vmem [resolvable:$true] %s56_s1 }
  0x15   :  { %v26_v2 = vsub.f32 %v25_v1, %v24_v0  ;;  %s94_s25 = scalar_lea.vmem %s57_s1, 16  ;;  %s98_s26 = scalar_lea.vmem %s57_s1, 32 }
  0x16   :  { %p95_p8 = scmp.ne.s32.totalorder %s57_s1, %s94_s25  ;;  %p99_p9 = scmp.lt.s32.totalorder %s57_s1, %s57_s1 }
  0x17   :  { %v27_v3 = vand.u32 2147483647, %v26_v2  ;;  %p100_p10 = scmp.lt.s32.totalorder %s98_s26, %s94_s25 }
  0x19   :  { %v28_v4 = vmul.f32 0.5, %v27_v3  ;;  %v65_v8 = vadd.f32 7.917595, %v27_v3  ;;  %vm34_vm0 = vcmp.lt.f32.partialorder %v27_v3, 10.0  ;;  %p101_p11 = por %p100_p10, %p99_p9 }
  0x1b   :  { %v29_v5 = vadd.f32 1.0, %v28_v4  ;;  %p102_p12 = pnand %p101_p11, %p95_p8 }
  0x1d   :  { %70 = vlog2.f32 %v29_v5 }
  0x27   :  { %v71_v6 = vpop.eup %70 }
  0x28   :  { %v31_v7 = vmul.f32 0.6931472, %v71_v6 }
  0x2a   :  { %v32_v9 = vmul.f32 10.0, %v31_v7 }
  0x2c   :  { %v35_v10 = vsel %vm34_vm0, %v32_v9, %v65_v8 }
  0x2d   :  { %v37_v11 = vsel %vm36_vm1, %v35_v10, 0.0 }
  0x2e   :  { %38 = vadd.xlane.f32.xlu0 %v37_v11 }
  0xbb   :  { %v39_v12 = vpop.xlane.xlu0 %38 }
  0xbc   :  { %v40_v13 = vrot.slane %v39_v12, 4 }
  0xbe   :  { %v41_v14 = vadd.f32 %v40_v13, %v39_v12 }
  0xc0   :  { %v42_v15 = vrot.slane %v41_v14, 2 }
  0xc2   :  { %v43_v16 = vadd.f32 %v42_v15, %v41_v14 }
  0xc4   :  { %v44_v17 = vrot.slane %v43_v16, 1 }
  0xc6   :  { %v45_v18 = vadd.f32 %v44_v17, %v43_v16 }
  0xc8   :  { %66 = vpush %v45_v18 }
  0xf9   :  { %s67_s24 = spop %66 }
  0xfa   :  { %v47_v19 = vstv %s67_s24 }
  0xfb   :  { %49 = vst.msk [vmem:[#allocation5] sm:$0x1] %vm48_vm2, %v47_v19 }
  0xfc   :  { %105 = shalt.err (!%p102_p12)
}
  0xfd   :  { %s106_s29 = scalar_lea.hbm %s166_s2, 16 }
  0xfe   :  { %p107_p13 = scmp.ne.s32.totalorder %s166_s2, %s106_s29  ;;  %p110_p0 = scmp.lt.u32.totalorder %s106_s29, %s166_s2 }
 0x100   :  { %p112_p1 = pnand %p110_p0, %p107_p13 }
 0x102   :  { %115 = shalt.err (!%p112_p1)
}
 0x103   :  { %59 = dma.vmem_to_hbm [thread:$0]  %s57_s1, 16, %s166_s2, [#allocation4]  }
 0x104   :  { %118 = dma.done.wait [#allocation4], 16  }
 0x105   :  { %119 = vsyncadd [#allocation4], 4294967280 }
 0x106   :  { %63 = vsyncpa [#allocation3], 1 }
 0x107   :  { %64 = vsyncpa [#allocation4], 1 }

</bundles_post_ra>
